<compile_context>
chip_gen: v5e
topology: v5e:2x2
jax: 0.10.0
libtpu: 0.0.40
codegen_flags: <defaults>
</compile_context>

<pallas_src>
import jax
import jax.numpy as jnp
from jax.experimental import pallas as pl
from jax.experimental.pallas import tpu as pltpu


def _bpr_kernel(uf_ref, pf_ref, nf_ref, out_ref):
    # uf/pf/nf : (Fp, TB) f32 tiles — factor axis on sublanes, batch on lanes.
    #            Item bias is an extra factor row (user side has ones there),
    #            so the reduction already includes it.
    # out      : (1, 2, TB) f32 — row 0 = pos_pred, row 1 = neg_pred.
    u = uf_ref[...]                                              # (Fp, TB)
    pos = jnp.sum(u * pf_ref[...], axis=0, keepdims=True)        # (1, TB)
    neg = jnp.sum(u * nf_ref[...], axis=0, keepdims=True)        # (1, TB)
    out_ref[0] = jnp.concatenate([pos, neg], axis=0)             # (2, TB)


def make_bpr_tables(user_factors, item_factors, item_biases):
    """Hoist (once) the transposed, bias-augmented factor tables.

    UT: (Fp, n_users) — user_factors.T + a row of ones (bias slot) + zero pad.
    IT: (Fp, n_items) — item_factors.T + the item-bias row + zero pad.
    Fp = round_up(F + 1, 8).
    """
    n_users, F = user_factors.shape
    n_items = item_factors.shape[0]
    Fp = pl.cdiv(F + 1, 8) * 8
    pad_f = Fp - (F + 1)

    UT = jnp.concatenate(
        [user_factors.astype(jnp.float32).T,
         jnp.ones((1, n_users), jnp.float32),
         jnp.zeros((pad_f, n_users), jnp.float32)], axis=0)
    IT = jnp.concatenate(
        [item_factors.astype(jnp.float32).T,
         item_biases.astype(jnp.float32).reshape(1, n_items),
         jnp.zeros((pad_f, n_items), jnp.float32)], axis=0)
    return UT, IT


def _pick_tile(B, Fp):
    """Batch-tile size from a VMEM budget, with bounded padding waste."""
    # 3 factor inputs x 2 pipeline buffers x Fp x tb x 4B must stay well under
    # the smallest scoped-VMEM default (v5e: 16 MiB); 8 MiB leaves headroom on
    # v7x's 32 MiB default / 64 MiB physical VMEM too.
    budget = 8 * 1024 * 1024
    tb_cap = (budget // (3 * 2 * Fp * 4)) // 128 * 128
    tb_cap = max(128, min(8192, tb_cap))
    # Keep a few grid steps (when B is big enough) so the "parallel" axis can
    # feed both v7x TensorCores and the pipeline has work; never force tiles
    # smaller than ~512 lanes just to create chunks.
    min_g = min(4, max(1, B // 512))
    g = max(pl.cdiv(B, tb_cap), min_g, 1)
    tb = pl.cdiv(pl.cdiv(B, g), 128) * 128
    G = pl.cdiv(B, tb)
    return tb, G


def bpr_forward_tables(user, pos_idx, neg_idx, UT, IT):
    """Forward pass given pre-built transposed tables (see make_bpr_tables)."""
    B = user.shape[0]
    Fp = UT.shape[0]
    tb, G = _pick_tile(B, Fp)
    Bpad = G * tb
    pad = Bpad - B

    u_idx = jnp.pad(user.astype(jnp.int32), (0, pad))
    p_idx = jnp.pad(pos_idx.astype(jnp.int32), (0, pad))
    n_idx = jnp.pad(neg_idx.astype(jnp.int32), (0, pad))

    # Wrapper-side gathers straight from the pre-transposed tables: the batch
    # axis lands on lanes with no extra (Bpad, F) transpose in HBM.
    uf = jnp.take(UT, u_idx, axis=1)   # (Fp, Bpad)
    pf = jnp.take(IT, p_idx, axis=1)   # (Fp, Bpad)
    nf = jnp.take(IT, n_idx, axis=1)   # (Fp, Bpad)

    grid_spec = pltpu.PrefetchScalarGridSpec(
        num_scalar_prefetch=0,
        grid=(G,),
        in_specs=[
            pl.BlockSpec((Fp, tb), lambda i: (0, i)),   # user factors (+1 row)
            pl.BlockSpec((Fp, tb), lambda i: (0, i)),   # pos item factors+bias
            pl.BlockSpec((Fp, tb), lambda i: (0, i)),   # neg item factors+bias
        ],
        out_specs=pl.BlockSpec((1, 2, tb), lambda i: (i, 0, 0)),
    )

    cost = pl.CostEstimate(
        flops=4 * Fp * Bpad,                          # 2 mul + 2 add per (f, b)
        transcendentals=0,
        bytes_accessed=(3 * Fp * Bpad + 2 * Bpad) * 4,
    )

    out = pl.pallas_call(
        _bpr_kernel,
        out_shape=jax.ShapeDtypeStruct((G, 2, tb), jnp.float32),
        grid_spec=grid_spec,
        compiler_params=pltpu.CompilerParams(
            dimension_semantics=("parallel",)),
        cost_estimate=cost,
    )(uf, pf, nf)

    pos_pred = out[:, 0, :].reshape(Bpad)[:B, None]
    neg_pred = out[:, 1, :].reshape(Bpad)[:B, None]
    return pos_pred, neg_pred


def bpr_forward(user, pos_idx, neg_idx, user_factors, item_factors, item_biases):
    """Convenience wrapper matching the PyTorch module's parameterization.

    user, pos_idx, neg_idx: int (B,)
    user_factors: f32 (n_users, F);  item_factors: f32 (n_items, F)
    item_biases : f32 (n_items, 1)
    returns (pos_pred, neg_pred): f32 (B, 1) each
    """
    UT, IT = make_bpr_tables(user_factors, item_factors, item_biases)
    return bpr_forward_tables(user, pos_idx, neg_idx, UT, IT)


if __name__ == "__main__":
    # Deterministic parameter init (nn.Embedding default: N(0, 1)).
    n_users, n_items, n_factors = 10, 20, 32
    B = 8

    key = jax.random.PRNGKey(0)
    k_uf, k_if, k_ib, k_u, k_p, k_n = jax.random.split(key, 6)

    user_factors = jax.random.normal(k_uf, (n_users, n_factors), jnp.float32)
    item_factors = jax.random.normal(k_if, (n_items, n_factors), jnp.float32)
    item_biases = jax.random.normal(k_ib, (n_items, 1), jnp.float32)

    user = jax.random.randint(k_u, (B,), 0, n_users, jnp.int32)
    pos_idx = jax.random.randint(k_p, (B,), 0, n_items, jnp.int32)
    neg_idx = jax.random.randint(k_n, (B,), 0, n_items, jnp.int32)

    pos_pred, neg_pred = bpr_forward(
        user, pos_idx, neg_idx, user_factors, item_factors, item_biases)
    jax.block_until_ready((pos_pred, neg_pred))

    # Pure-JAX reference of the PyTorch forward for a sanity check.
    ref_pos = (user_factors[user] * item_factors[pos_idx]).sum(-1)[:, None] \
        + item_biases[pos_idx]
    ref_neg = (user_factors[user] * item_factors[neg_idx]).sum(-1)[:, None] \
        + item_biases[neg_idx]

    assert pos_pred.shape == (B, 1) and neg_pred.shape == (B, 1)
    assert jnp.allclose(pos_pred, ref_pos, atol=1e-5, rtol=1e-5)
    assert jnp.allclose(neg_pred, ref_neg, atol=1e-5, rtol=1e-5)

    print("KERNEL_OK")
</pallas_src>

<mosaic_0001>
module attributes {stable_mosaic.version = 11 : i64} {
  func.func @_bpr_kernel(%arg0: i32, %arg1: memref<40x128xf32, #tpu.memory_space<vmem>>, %arg2: memref<40x128xf32, #tpu.memory_space<vmem>>, %arg3: memref<40x128xf32, #tpu.memory_space<vmem>>, %arg4: memref<1x2x128xf32, #tpu.memory_space<vmem>>) attributes {dimension_semantics = [#tpu.dimension_semantics<parallel>], iteration_bounds = array<i64: 1>, scalar_prefetch = 0 : i64, scratch_operands = 0 : i64, tpu.core_type = #tpu.core_type<tc>, window_params = [{transform_indices = @transform_0, window_bounds = array<i64: 40, 128>}, {transform_indices = @transform_1, window_bounds = array<i64: 40, 128>}, {transform_indices = @transform_2, window_bounds = array<i64: 40, 128>}, {transform_indices = @transform_3, window_bounds = array<i64: 1, 2, 128>}]} {
    %c0 = arith.constant 0 : index
    %c0_0 = arith.constant 0 : index
    %0 = vector.load %arg1[%c0, %c0_0] : memref<40x128xf32, #tpu.memory_space<vmem>>, vector<40x128xf32>
    %c0_1 = arith.constant 0 : index
    %c0_2 = arith.constant 0 : index
    %1 = vector.load %arg2[%c0_1, %c0_2] : memref<40x128xf32, #tpu.memory_space<vmem>>, vector<40x128xf32>
    %2 = arith.mulf %0, %1 : vector<40x128xf32>
    %cst = arith.constant dense<0.000000e+00> : vector<128xf32>
    %3 = vector.multi_reduction <add>, %2, %cst [0] : vector<40x128xf32> to vector<128xf32>
    %4 = vector.shape_cast %3 : vector<128xf32> to vector<1x128xf32>
    %c0_3 = arith.constant 0 : index
    %c0_4 = arith.constant 0 : index
    %5 = vector.load %arg3[%c0_3, %c0_4] : memref<40x128xf32, #tpu.memory_space<vmem>>, vector<40x128xf32>
    %6 = arith.mulf %0, %5 : vector<40x128xf32>
    %cst_5 = arith.constant dense<0.000000e+00> : vector<128xf32>
    %7 = vector.multi_reduction <add>, %6, %cst_5 [0] : vector<40x128xf32> to vector<128xf32>
    %8 = vector.shape_cast %7 : vector<128xf32> to vector<1x128xf32>
    %9 = tpu.concatenate %4, %8 in 0 : vector<1x128xf32>, vector<1x128xf32> -> vector<2x128xf32>
    %c0_6 = arith.constant 0 : index
    %c0_7 = arith.constant 0 : index
    %c0_8 = arith.constant 0 : index
    %10 = vector.load %arg4[%c0_6, %c0_7, %c0_8] : memref<1x2x128xf32, #tpu.memory_space<vmem>>, vector<1x2x128xf32>
    %11 = vector.shape_cast %10 : vector<1x2x128xf32> to vector<2x128xf32>
    %12 = vector.shape_cast %9 : vector<2x128xf32> to vector<1x2x128xf32>
    tpu.vector_store %arg4[%c0_6, %c0_7, %c0_8], %12 {strides = array<i32>} : memref<1x2x128xf32, #tpu.memory_space<vmem>>, vector<1x2x128xf32>,
    return
  }
  func.func @transform_0(%arg0: i32) -> (i32, i32) {
    %c0_i32 = arith.constant 0 : i32
    %c0_i32_0 = arith.constant 0 : i32
    return %c0_i32, %arg0 : i32, i32
  }
  func.func @transform_1(%arg0: i32) -> (i32, i32) {
    %c0_i32 = arith.constant 0 : i32
    %c0_i32_0 = arith.constant 0 : i32
    return %c0_i32, %arg0 : i32, i32
  }
  func.func @transform_2(%arg0: i32) -> (i32, i32) {
    %c0_i32 = arith.constant 0 : i32
    %c0_i32_0 = arith.constant 0 : i32
    return %c0_i32, %arg0 : i32, i32
  }
  func.func @transform_3(%arg0: i32) -> (i32, i32, i32) {
    %c0_i32 = arith.constant 0 : i32
    %c0_i32_0 = arith.constant 0 : i32
    %c0_i32_1 = arith.constant 0 : i32
    return %arg0, %c0_i32, %c0_i32_0 : i32, i32, i32
  }
}

</mosaic_0001>

<bundles_post_ra>
// kernel: tpu_custom_call.1
= control target key start
LH: loop header
LB: loop body
LE: loop exit
PB: predicated region body
PF: predicated region fallthrough
CT: control target
= control target key end

     0   :  { %8 = vsyncpa [#allocation3], 0  ;;  %s274_s0 = inlined_call_operand.hbm [shape: f32[40,128], index: 0, kind: input, shape index: {}]   ;;  %s275_s1 = inlined_call_operand.hbm [shape: f32[40,128], index: 1, kind: input, shape index: {}]   ;;  %s276_s2 = inlined_call_operand.hbm [shape: f32[40,128], index: 2, kind: input, shape index: {}]   ;;  %s277_s3 = inlined_call_operand.hbm [shape: f32[1,2,128], index: 3, kind: output, shape index: {}]  }
   0x1   :  { %9 = vsyncpa [#allocation6], 0 }
   0x2   :  { %10 = vsyncpa [#allocation4], 0  ;;  %s28_s14 = sshll.u32 %s275_s1, 4  ;;  %s236_s15 = smov [#allocation5]   ;;  %s29_s14 = int_to_ptr.hbm [resolvable:$true] %s28_s14 }
   0x3   :  { %s30_s16 = sshll.u32 %s236_s15, 4  ;;  %s15_s19 = sshll.u32 %s274_s0, 4  ;;  %s31_s16 = int_to_ptr.vmem [resolvable:$true] %s30_s16  ;;  %s16_s19 = int_to_ptr.hbm [resolvable:$true] %s15_s19 }
   0x4   :  { %s237_s20 = smov 128   ;;  %s238_s21 = smov 8  }
   0x5   :  { %36 = dma.hbm_to_vmem [thread:$0]  %s29_s14, 640, %s31_s16, [#allocation6], %s237_s20, %s237_s20, %s238_s21  }
   0x6   :  { %s239_s22 = smov [#allocation2]   ;;  %s41_s26 = sshll.u32 %s276_s2, 4  ;;  %s42_s26 = int_to_ptr.hbm [resolvable:$true] %s41_s26 }
   0x7   :  { %s17_s23 = sshll.u32 %s239_s22, 4  ;;  %s240_s1 = smov [#allocation7]   ;;  %s18_s23 = int_to_ptr.vmem [resolvable:$true] %s17_s23 }
   0x8   :  { %23 = dma.hbm_to_vmem [thread:$0]  %s16_s19, 640, %s18_s23, [#allocation3], %s237_s20, %s237_s20, %s238_s21  }
   0x9   :  { %s43_s27 = sshll.u32 %s240_s1, 4  ;;  %s44_s27 = int_to_ptr.vmem [resolvable:$true] %s43_s27 }
   0xa   :  { %49 = dma.hbm_to_vmem [thread:$0]  %s42_s26, 640, %s44_s27, [#allocation6], %s237_s20, %s237_s20, %s238_s21  }
   0xb   :  { %230 = dma.done.wait [#allocation3], 640  }
   0xc   :  { %231 = vsyncadd [#allocation3], 4294966656 }
   0xd   :  { %232 = dma.done.wait [#allocation6], 1280  }
   0xe   :  { %233 = vsyncadd [#allocation6], 4294966016  ;;  %v62_v0 = vld [vmem:[#allocation2] sm:$0xff]  ;;  %v63_v1 = vld [vmem:[#allocation2 + $0x8] sm:$0xff]  ;;  %s241_s0 = smov [#allocation8]   ;;  %s117_s30 = sshll.u32 %s277_s3, 4  ;;  %s118_s30 = int_to_ptr.hbm [resolvable:$true] %s117_s30 }
   0xf   :  { %v64_v2 = vld [vmem:[#allocation2 + $0x10] sm:$0xff]  ;;  %v65_v3 = vld [vmem:[#allocation2 + $0x18] sm:$0xff]  ;;  %v67_v4 = vld [vmem:[#allocation5] sm:$0xff]  ;;  %s115_s2 = sshll.u32 %s241_s0, 4  ;;  %vm107_vm0 = vcmask 1040384   ;;  %s116_s2 = int_to_ptr.vmem [resolvable:$true] %s115_s2 }
  0x10   :  { %v68_v5 = vld [vmem:[#allocation5 + $0x8] sm:$0xff]  ;;  %v69_v6 = vld [vmem:[#allocation5 + $0x10] sm:$0xff]  ;;  %v70_v7 = vld [vmem:[#allocation5 + $0x18] sm:$0xff]  ;;  %v72_v8 = vmul.f32 %v67_v4, %v62_v0 }
  0x11   :  { %v66_v9 = vld [vmem:[#allocation2 + $0x20] sm:$0xff]  ;;  %v73_v10 = vmul.f32 %v68_v5, %v63_v1  ;;  %v74_v11 = vmul.f32 %v69_v6, %v64_v2  ;;  %v87_v12 = vld [vmem:[#allocation7] sm:$0xff]  ;;  %v88_v13 = vld [vmem:[#allocation7 + $0x8] sm:$0xff]  ;;  %v75_v19 = vmul.f32 %v70_v7, %v65_v3 }
  0x12   :  { %v71_v14 = vld [vmem:[#allocation5 + $0x20] sm:$0xff]  ;;  %v89_v15 = vld [vmem:[#allocation7 + $0x10] sm:$0xff]  ;;  %v92_v17 = vmul.f32 %v87_v12, %v62_v0  ;;  %v93_v18 = vmul.f32 %v88_v13, %v63_v1  ;;  %v91_v21 = vld [vmem:[#allocation7 + $0x20] sm:$0xff] }
  0x13   :  { %v90_v16 = vld [vmem:[#allocation7 + $0x18] sm:$0xff]  ;;  %v77_v20 = vadd.f32 %v73_v10, %v72_v8  ;;  %v94_v22 = vmul.f32 %v89_v15, %v64_v2  ;;  %v76_v25 = vmul.f32 %v71_v14, %v66_v9  ;;  %v96_v27 = vmul.f32 %v91_v21, %v66_v9 }
  0x14   :  { %v95_v23 = vmul.f32 %v90_v16, %v65_v3  ;;  %v97_v24 = vadd.f32 %v93_v18, %v92_v17 }
  0x15   :  { %v78_v26 = vadd.f32 %v77_v20, %v74_v11 }
  0x16   :  { %v98_v28 = vadd.f32 %v97_v24, %v94_v22 }
  0x17   :  { %v79_v29 = vadd.f32 %v78_v26, %v75_v19 }
  0x18   :  { %v99_v30 = vadd.f32 %v98_v28, %v95_v23 }
  0x19   :  { %v80_v31 = vadd.f32 %v79_v29, %v76_v25 }
  0x1a   :  { %v100_v32 = vadd.f32 %v99_v30, %v96_v27 }
  0x1b   :  { %v81_v33 = vrot.slane %v80_v31, 4 }
  0x1c   :  { %v101_v34 = vrot.slane %v100_v32, 4 }
  0x1d   :  { %v82_v35 = vadd.f32 %v81_v33, %v80_v31 }
  0x1e   :  { %v102_v36 = vadd.f32 %v101_v34, %v100_v32 }
  0x1f   :  { %v83_v37 = vrot.slane %v82_v35, 2 }
  0x20   :  { %v103_v38 = vrot.slane %v102_v36, 2 }
  0x21   :  { %v84_v39 = vadd.f32 %v83_v37, %v82_v35 }
  0x22   :  { %v104_v40 = vadd.f32 %v103_v38, %v102_v36 }
  0x23   :  { %v85_v41 = vrot.slane %v84_v39, 1 }
  0x24   :  { %v105_v42 = vrot.slane %v104_v40, 1 }
  0x25   :  { %v86_v43 = vadd.f32 %v85_v41, %v84_v39 }
  0x26   :  { %v106_v44 = vadd.f32 %v105_v42, %v104_v40 }
  0x28   :  { %v108_v45 = vsel %vm107_vm0, %v86_v43, %v106_v44 }
  0x29   :  { %109 = vst [vmem:[#allocation8] sm:$0x3] %v108_v45 }
  0x2a   :  { %120 = dma.vmem_to_hbm [thread:$0]  %s116_s2, 32, %s118_s30, [#allocation4]  }
  0x2b   :  { %234 = dma.done.wait [#allocation4], 32  }
  0x2c   :  { %235 = vsyncadd [#allocation4], 4294967264 }
  0x2d   :  { %125 = vsyncpa [#allocation3], 1 }
  0x2e   :  { %126 = vsyncpa [#allocation6], 1 }
  0x2f   :  { %127 = vsyncpa [#allocation4], 1 }

</bundles_post_ra>
